<compile_context>
chip_gen: v7x
topology: tpu7x:2x2x1
jax: 0.10.0
libtpu: 0.0.40
codegen_flags: <defaults>
</compile_context>

<pallas_src>
import functools

import jax
import jax.numpy as jnp
from jax.experimental import pallas as pl
from jax.experimental.pallas import tpu as pltpu


def _graphsage_concat_kernel(w1_ref, w2_ref, e1_ref, e2_ref, out_ref):
    """One node tile of the classifier head in lane-dense (C, TN) layout.

    w1_ref : (C, d1)   classifier weight, enc1 half (resident across the grid)
    w2_ref : (C, d2)   classifier weight, enc2 half (resident across the grid)
    e1_ref : (d1, TN)  enc1.forward_result node tile
    e2_ref : (d2, TN)  enc2.forward_result node tile
    out_ref: (C, TN)   scores tile == weight @ cat([e1, e2], 0) for this tile
    """
    acc = jnp.dot(w1_ref[...], e1_ref[...], preferred_element_type=jnp.float32)
    acc = acc + jnp.dot(w2_ref[...], e2_ref[...], preferred_element_type=jnp.float32)
    out_ref[...] = acc.astype(out_ref.dtype)


def _round_up(x, m):
    return ((x + m - 1) // m) * m


def _cdiv(a, b):
    return (a + b - 1) // b


def _choose_tn(n, tn_req):
    """Node-tile size.

    Multiple of 128 (or the full node extent), large enough that each grid step
    moves >= ~1 MB (amortizes the ~0.35us per-step overhead), and with an even
    tile count when possible so the 1-D "parallel" grid splits across v7x's two
    TensorCores.
    """
    tn = max(128, _round_up(int(tn_req), 128))
    if tn >= n:
        return n  # single full-extent tile (block dim == array dim is always legal)
    num = _cdiv(n, tn)
    if num % 2 == 1:  # best-effort even tile count for v7x megacore
        tn_even = max(128, _round_up(_cdiv(n, num + 1), 128))
        if _cdiv(n, tn_even) % 2 == 0:
            tn = tn_even
    return tn


def supervised_graphsage_concat_forward(e1, e2, weight, *, tn=8192,
                                        return_node_major=True):
    """e1: (d1, N), e2: (d2, N), weight: (C, d1+d2).

    Returns scores.t() == (N, C) float32 (module semantics) when
    return_node_major=True; pass False to get the lane-dense (C, N) form and
    skip the final transpose copy if the consumer (e.g. a softmax over C)
    can take it directly.
    """
    d1, n = e1.shape
    d2, n2 = e2.shape
    assert n == n2, "enc1/enc2 outputs must cover the same node batch"
    c, dtot = weight.shape
    assert dtot == d1 + d2

    # Split the classifier weight outside the kernel (tiny XLA slices, no
    # in-kernel lane-offset relayout). No dtype copies of the big embeddings.
    w1 = weight[:, :d1]
    w2 = weight[:, d1:]

    tn = _choose_tn(n, tn)
    grid = (_cdiv(n, tn),)

    in_itemsize = jnp.dtype(e1.dtype).itemsize
    w_itemsize = jnp.dtype(weight.dtype).itemsize
    cost = pl.CostEstimate(
        flops=2 * n * dtot * c,
        transcendentals=0,
        bytes_accessed=n * dtot * in_itemsize      # embeddings read
        + c * dtot * w_itemsize                    # weight read
        + c * n * 4,                               # scores written (f32)
    )

    # VMEM per step (double-buffered): ~2 * tn * (dtot*4 + c*4) bytes
    #   -> ~4.7 MB at tn=8192, d=64, c=8; well inside 32 MiB scoped VMEM on all gens.
    scores_cn = pl.pallas_call(
        _graphsage_concat_kernel,
        out_shape=jax.ShapeDtypeStruct((c, n), jnp.float32),
        grid_spec=pltpu.PrefetchScalarGridSpec(
            num_scalar_prefetch=0,
            grid=grid,
            in_specs=[
                pl.BlockSpec((c, d1), lambda i: (0, 0)),   # w1 resident
                pl.BlockSpec((c, d2), lambda i: (0, 0)),   # w2 resident
                pl.BlockSpec((d1, tn), lambda i: (0, i)),  # e1 node tile
                pl.BlockSpec((d2, tn), lambda i: (0, i)),  # e2 node tile
            ],
            out_specs=pl.BlockSpec((c, tn), lambda i: (0, i)),
        ),
        compiler_params=pltpu.CompilerParams(
            dimension_semantics=("parallel",),   # node tiles shard across v7x's 2 TCs
            vmem_limit_bytes=32 * 1024 * 1024,
        ),
        cost_estimate=cost,
    )(w1, w2, e1, e2)

    if return_node_major:
        # Module returns scores.t() == (N, C).  Done once in the wrapper so the
        # in-kernel stores stay lane-dense (N on the lane axis).
        return scores_cn.T
    return scores_cn


def xavier_uniform(key, shape, dtype=jnp.float32):
    # torch.nn.init.xavier_uniform_ for a 2-D (fan_out, fan_in) tensor.
    fan_out, fan_in = shape
    bound = (6.0 / (fan_in + fan_out)) ** 0.5
    return jax.random.uniform(key, shape, dtype, minval=-bound, maxval=bound)


if __name__ == "__main__":
    num_nodes = 300     # not a multiple of 128 -> exercises the ragged-tail masking
    embed_dim1 = 32     # enc1.embed_dim
    embed_dim2 = 32     # enc2.embed_dim
    num_classes = 8

    key = jax.random.PRNGKey(0)
    k1, k2, kw = jax.random.split(key, 3)

    # Synthetic encoder outputs (what enc1/enc2 would have produced), layout (embed_dim, N).
    enc1_out = jax.random.normal(k1, (embed_dim1, num_nodes), jnp.float32)
    enc2_out = jax.random.normal(k2, (embed_dim2, num_nodes), jnp.float32)

    # Deterministic xavier-uniform classifier weight, shape (num_classes, d1 + d2).
    weight = xavier_uniform(kw, (num_classes, embed_dim1 + embed_dim2))

    fwd = jax.jit(functools.partial(supervised_graphsage_concat_forward, tn=128))
    scores = fwd(enc1_out, enc2_out, weight)
    scores = jax.block_until_ready(scores)

    # Reference (plain JAX, f32) check of the exact PyTorch math.
    embeds = jnp.concatenate([enc1_out, enc2_out], axis=0)
    ref = (weight @ embeds).T
    assert scores.shape == (num_nodes, num_classes)
    # Tolerance covers the TPU MXU's default f32 matmul rounding behavior.
    max_err = float(jnp.max(jnp.abs(scores - ref)))
    assert jnp.allclose(scores, ref, atol=5e-2, rtol=1e-2), max_err

    print("KERNEL_OK")
</pallas_src>

<mosaic_0001>
module attributes {stable_mosaic.version = 11 : i64} {
  func.func @_graphsage_concat_kernel(%arg0: i32, %arg1: memref<8x32xf32, #tpu.memory_space<vmem>>, %arg2: memref<8x32xf32, #tpu.memory_space<vmem>>, %arg3: memref<32x128xf32, #tpu.memory_space<vmem>>, %arg4: memref<32x128xf32, #tpu.memory_space<vmem>>, %arg5: memref<8x128xf32, #tpu.memory_space<vmem>>) attributes {dimension_semantics = [#tpu.dimension_semantics<parallel>], iteration_bounds = array<i64: 3>, scalar_prefetch = 0 : i64, scratch_operands = 0 : i64, tpu.core_type = #tpu.core_type<tc>, window_params = [{pipeline_mode = #tpu.pipeline_mode<synchronous>, transform_indices = @transform_0, window_bounds = array<i64: 8, 32>}, {pipeline_mode = #tpu.pipeline_mode<synchronous>, transform_indices = @transform_1, window_bounds = array<i64: 8, 32>}, {transform_indices = @transform_2, window_bounds = array<i64: 32, 128>}, {transform_indices = @transform_3, window_bounds = array<i64: 32, 128>}, {transform_indices = @transform_4, window_bounds = array<i64: 8, 128>}]} {
    %c0 = arith.constant 0 : index
    %c0_0 = arith.constant 0 : index
    %0 = vector.load %arg1[%c0, %c0_0] : memref<8x32xf32, #tpu.memory_space<vmem>>, vector<8x32xf32>
    %c0_1 = arith.constant 0 : index
    %c0_2 = arith.constant 0 : index
    %1 = vector.load %arg3[%c0_1, %c0_2] : memref<32x128xf32, #tpu.memory_space<vmem>>, vector<32x128xf32>
    %cst = arith.constant dense<0.000000e+00> : vector<8x128xf32>
    %2 = tpu.matmul %0, %1, %cst {dimension_numbers = #tpu.dot_dimension_numbers<[1], [0], [0], [1], [0, 0, 1, 1], [], []>} : vector<8x32xf32>, vector<32x128xf32>, vector<8x128xf32> -> vector<8x128xf32>
    %c0_3 = arith.constant 0 : index
    %c0_4 = arith.constant 0 : index
    %3 = vector.load %arg2[%c0_3, %c0_4] : memref<8x32xf32, #tpu.memory_space<vmem>>, vector<8x32xf32>
    %c0_5 = arith.constant 0 : index
    %c0_6 = arith.constant 0 : index
    %4 = vector.load %arg4[%c0_5, %c0_6] : memref<32x128xf32, #tpu.memory_space<vmem>>, vector<32x128xf32>
    %cst_7 = arith.constant dense<0.000000e+00> : vector<8x128xf32>
    %5 = tpu.matmul %3, %4, %cst_7 {dimension_numbers = #tpu.dot_dimension_numbers<[1], [0], [0], [1], [0, 0, 1, 1], [], []>} : vector<8x32xf32>, vector<32x128xf32>, vector<8x128xf32> -> vector<8x128xf32>
    %6 = arith.addf %2, %5 : vector<8x128xf32>
    %c0_8 = arith.constant 0 : index
    %c0_9 = arith.constant 0 : index
    %7 = vector.load %arg5[%c0_8, %c0_9] : memref<8x128xf32, #tpu.memory_space<vmem>>, vector<8x128xf32>
    tpu.vector_store %arg5[%c0_8, %c0_9], %6 {strides = array<i32>} : memref<8x128xf32, #tpu.memory_space<vmem>>, vector<8x128xf32>,
    return
  }
  func.func @transform_0(%arg0: i32) -> (i32, i32) {
    %c0_i32 = arith.constant 0 : i32
    %c0_i32_0 = arith.constant 0 : i32
    %c0_i32_1 = arith.constant 0 : i32
    return %c0_i32, %c0_i32_0 : i32, i32
  }
  func.func @transform_1(%arg0: i32) -> (i32, i32) {
    %c0_i32 = arith.constant 0 : i32
    %c0_i32_0 = arith.constant 0 : i32
    %c0_i32_1 = arith.constant 0 : i32
    return %c0_i32, %c0_i32_0 : i32, i32
  }
  func.func @transform_2(%arg0: i32) -> (i32, i32) {
    %c0_i32 = arith.constant 0 : i32
    %c0_i32_0 = arith.constant 0 : i32
    return %c0_i32, %arg0 : i32, i32
  }
  func.func @transform_3(%arg0: i32) -> (i32, i32) {
    %c0_i32 = arith.constant 0 : i32
    %c0_i32_0 = arith.constant 0 : i32
    return %c0_i32, %arg0 : i32, i32
  }
  func.func @transform_4(%arg0: i32) -> (i32, i32) {
    %c0_i32 = arith.constant 0 : i32
    %c0_i32_0 = arith.constant 0 : i32
    return %c0_i32, %arg0 : i32, i32
  }
}

</mosaic_0001>

<bundles_post_ra>
// kernel: supervised_graphsage_concat_forward.1
= control target key start
LH: loop header
LB: loop body
LE: loop exit
PB: predicated region body
PF: predicated region fallthrough
CT: control target
= control target key end

     0   :  { %9 = vsyncpa [#allocation3], 0  ;;  %s1032_s0 = inlined_call_operand.vmem [shape: f32[8,32], index: 0, kind: input, shape index: {}]   ;;  %s1033_s1 = inlined_call_operand.vmem [shape: f32[8,32], index: 1, kind: input, shape index: {}]   ;;  %s1034_s2 = inlined_call_operand.hbm [shape: f32[32,300], index: 2, kind: input, shape index: {}]   ;;  %s1035_s3 = inlined_call_operand.hbm [shape: f32[32,300], index: 3, kind: input, shape index: {}]   ;;  %s1036_s4 = inlined_call_operand.hbm [shape: f32[8,300], index: 4, kind: output, shape index: {}]  }
   0x1   :  { %11 = vsyncpa [#allocation3 + $0x1], 0 }
   0x2   :  { %12 = vsyncpa [#allocation6], 0 }
   0x3   :  { %14 = vsyncpa [#allocation6 + $0x1], 0 }
   0x4   :  { %15 = vsyncpa [#allocation4], 0 }
   0x5   :  { %17 = vsyncpa [#allocation4 + $0x1], 0  ;;  %s804_s15 = smov 0   ;;  %s806_s16 = smov 0  }
   0x6   :  { %s808_s17 = smov 0   ;;  %s810_s18 = smov 0  }
   0x7 LB: > { %s825_s19 = sadd.s32 4294967295, %s768_s18   ;;  %s519_s20 = sadd.s32 4294967294, %s768_s18   ;;  %s768_s18 = sphi %s810_s18, %s1054_s18   ;;  %s764_s17 = sphi %s808_s17, %s1053_s17   ;;  %s760_s16 = sphi %s806_s16, %s1052_s16   ;;  %s756_s15 = sphi %s804_s15, %s1051_s15  }
   0x8   : > { %s829_s21 = sadd.s32 1, %s768_s18   ;;  %s72_s22 = sadd.s32 1, %s764_s17 }
   0x9   : > { %s69_s23 = ssub.s32 %s768_s18, %s829_s21  ;;  %p79_p0 = scmp.ne.s32.totalorder %s764_s17, %s760_s16 }
   0xa   : > { %p70_p1 = scmp.eq.s32.totalorder %s69_s23, 0  ;;  %p80_p2 = scmp.eq.s32.totalorder %s768_s18, 0 }
   0xb   : > { %p85_p3 = scmp.ne.s32.totalorder %s760_s16, %s756_s15  ;;  %p86_p4 = scmp.eq.s32.totalorder %s825_s19, 0 }
   0xc   : > { %s841_s24 = scalar_select %p70_p1, %s764_s17, %s72_s22  }
   0xd   : > { %p843_p5 = por %p80_p2, %p79_p0  ;;  %p847_p6 = por %p86_p4, %p85_p3 }
   0xe   : > { %p135_p7 = scmp.eq.s32.totalorder %s825_s19, 2  ;;  %p141_p8 = scmp.eq.s32.totalorder %s519_s20, 2 }
   0xf   : > { %s1041_s26 = scalar_select %p847_p6, 1, 0 }
  0x10   : > { %p598_p9 = scmp.lt.s32.totalorder %s768_s18, 3  ;;  %p853_p10 = por %p135_p7, %p79_p0 }
  0x11   : > { %p857_p11 = por %p141_p8, %p85_p3  ;;  %s862_s29 = sand.u32 1, %s764_s17  }
  0x12   : > { %s1042_s27 = scalar_select %p853_p10, 1, 0 }
  0x13   : > { %s1043_s28 = scalar_select %p857_p11, 1, 0 }
  0x14   : > { %s523_s30 = sshll.u32 %s768_s18, 7  ;;  %s522_s5 = sshll.u32 %s862_s29, 5 }
  0x15   : > { %s871_s8 = scalar_lea.hbm %s1034_s2, %s523_s30  ;;  %s171_s9 = scalar_lea.vmem [#allocation2], %s522_s5 }
  0x16   : > { %s177_s10 = sshll.u32 %s171_s9, 4  ;;  %p877_p12 = pnand %p598_p9, %p843_p5  ;;  %s881_s10 = int_to_ptr.vmem [resolvable:$true] %s177_s10 }
  0x17   : > { %s168_s12 = scalar_lea.sflag [#allocation3], %s862_s29  ;;  %s638_s13 = scalar_lea.hbm %s871_s8, 512 }
  0x18   : > { %p639_p0 = scmp.ne.s32.totalorder %s871_s8, %s638_s13  ;;  %p640_p1 = pneg %p877_p12 }
  0x19   : > { %s643_s22 = scalar_lea.hbm %s1034_s2, 1536  ;;  %p644_p4 = scmp.lt.u32.totalorder %s871_s8, %s1034_s2 }
  0x1a   : > { %p641_p2 = pnand %p640_p1, %p639_p0  ;;  %p645_p5 = scmp.lt.u32.totalorder %s643_s22, %s638_s13 }
  0x1b   : > { %p647_p8 = scmp.lt.u32.totalorder %s638_s13, %s871_s8 }
  0x1c   : > { %p642_p3 = pneg %p641_p2  ;;  %p646_p7 = por %p645_p5, %p644_p4 }
  0x1e   : > { %p648_p9 = por %p647_p8, %p646_p7 }
  0x20   : > { %p649_p13 = pnand %p648_p9, %p642_p3 }
  0x22   : > { %652 = shalt.err (!%p649_p13)
}
  0x23   : > { %s653_s6 = scalar_lea.vmem %s881_s10, 512  ;;  %s770_s7 = smov [#allocation2]  }
  0x24   : > { %p654_p0 = scmp.ne.s32.totalorder %s881_s10, %s653_s6  ;;  %s658_s9 = sshll.u32 %s770_s7, 4  ;;  %s659_s9 = int_to_ptr.vmem [resolvable:$false] %s658_s9 }
  0x25   : > { %s660_s14 = scalar_lea.vmem %s659_s9, 1024  ;;  %p661_p10 = scmp.lt.s32.totalorder %s881_s10, %s659_s9 }
  0x26   : > { %p656_p2 = pnand %p654_p0, %p640_p1  ;;  %p662_p4 = scmp.lt.s32.totalorder %s660_s14, %s653_s6 }
  0x28   : > { %p657_p11 = pneg %p656_p2  ;;  %p663_p5 = por %p662_p4, %p661_p10 }
  0x2a   : > { %p664_p7 = pnand %p663_p5, %p657_p11 }
  0x2c   : > { %667 = shalt.err (!%p664_p7)
}
  0x2d   : > { %s1038_s13 = smov 384   ;;  %s772_s20 = smov 128  }
  0x2e   : > { %s773_s22 = smov 8   ;;  %p205_p10 = scmp.lt.s32.totalorder %s768_s18, 4 }
  0x2f   : > { %590 = dma.hbm_to_vmem [thread:$0]  (!%p877_p12), %s871_s8, 512, %s881_s10, %s168_s12, %s1038_s13, %s772_s20, %s773_s22  }
  0x30   : > { %s921_s6 = scalar_lea.hbm %s1035_s3, %s523_s30  ;;  %p1045_p11 = scmp.ge.s32.totalorder %s768_s18, 1 }
  0x31   : > { %s191_s9 = scalar_lea.vmem [#allocation5], %s522_s5  ;;  %s188_s8 = scalar_lea.sflag [#allocation6], %s862_s29 }
  0x32   : > { %p925_p13 = pnand %p1045_p11, %p205_p10  ;;  %s197_s14 = sshll.u32 %s191_s9, 4  ;;  %s931_s14 = int_to_ptr.vmem [resolvable:$true] %s197_s14 }
  0x33   : > { %s668_s10 = scalar_lea.hbm %s921_s6, 512  ;;  %s673_s23 = scalar_lea.hbm %s1035_s3, 1536 }
  0x34   : > { %p669_p3 = scmp.ne.s32.totalorder %s921_s6, %s668_s10  ;;  %p674_p0 = scmp.lt.u32.totalorder %s921_s6, %s1035_s3 }
  0x35   : > { %p675_p2 = scmp.lt.u32.totalorder %s673_s23, %s668_s10  ;;  %p677_p5 = scmp.lt.u32.totalorder %s668_s10, %s921_s6 }
  0x36   : > { %p671_p8 = pnand %p669_p3, %p640_p1 }
  0x37   : > { %p676_p4 = por %p675_p2, %p674_p0 }
  0x38   : > { %p672_p9 = pneg %p671_p8 }
  0x39   : > { %p678_p7 = por %p677_p5, %p676_p4 }
  0x3b   : > { %p679_p10 = pnand %p678_p7, %p672_p9 }
  0x3d   : > { %682 = shalt.err (!%p679_p10)
}
  0x3e   : > { %s683_s5 = scalar_lea.vmem %s931_s14, 512  ;;  %s774_s9 = smov [#allocation5]  }
  0x3f   : > { %p684_p11 = scmp.ne.s32.totalorder %s931_s14, %s683_s5  ;;  %s688_s30 = sshll.u32 %s774_s9, 4  ;;  %s689_s30 = int_to_ptr.vmem [resolvable:$false] %s688_s30 }
  0x40   : > { %s690_s13 = scalar_lea.vmem %s689_s30, 1024  ;;  %p691_p6 = scmp.lt.s32.totalorder %s931_s14, %s689_s30 }
  0x41   : > { %p686_p3 = pnand %p684_p11, %p640_p1  ;;  %p692_p0 = scmp.lt.s32.totalorder %s690_s13, %s683_s5 }
  0x43   : > { %p687_p8 = pneg %p686_p3  ;;  %p693_p2 = por %p692_p0, %p691_p6 }
  0x45   : > { %p694_p4 = pnand %p693_p2, %p687_p8 }
  0x47   : > { %697 = shalt.err (!%p694_p4)
}
  0x48   : > { %s1047_s10 = smov 384   ;;  %209 = sbr.rel (%p925_p13) target bundleno = 321 (0x141), region = 36 }
  0x49   : > { %593 = dma.hbm_to_vmem [thread:$0]  (!%p877_p12), %s921_s6, 512, %s931_s14, %s188_s8, %s1047_s10, %s772_s20, %s773_s22  }
  0x4a   : > { %s965_s12 = sand.u32 (!%p925_p13), 1, %s760_s16   ;;  %p1048_p6 = scmp.ne.s32.totalorder (!%p925_p13), %s1041_s26, 0 }
  0x4b   : > { %s527_s23 = sshll.u32 (!%p925_p13), %s965_s12, 5  ;;  %s212_s25 = scalar_lea.sflag (!%p925_p13), [#allocation3], %s965_s12 }
  0x4c   : > { %s215_s11 = scalar_lea.vmem (!%p925_p13), [#allocation2], %s527_s23 }
  0x4f   : > { %743 = dma.done.wait (%p1048_p6), %s212_s25, 512  }
  0x50   : > { %745 = vsyncadd (%p1048_p6), %s212_s25, 4294966784  ;;  %s221_s29 = scalar_lea.sflag [#allocation6], %s965_s12  ;;  %s224_s20 = scalar_lea.vmem [#allocation5], %s527_s23 }
  0x51   : > { %747 = dma.done.wait (%p1048_p6), %s221_s29, 512  }
  0x52   : > { %749 = vsyncadd (%p1048_p6), %s221_s29, 4294966784  ;;  %v775_v0 = vmov 0.0|0.0   ;;  %vm776_vm0 = vmmov 0   ;;  %v777_v1 = vmov 0.0   ;;  %v260_v2 = vld [vmem:[%s224_s20] sm:$0xff]  ;;  %v261_v3 = vld [vmem:[%s224_s20 + $0x8] sm:$0xff] }
  0x53   : > { %568 = vmatprep.subr.bf16.mxu1 %v775_v0  ;;  %574 = vmatprep.subr.bf16.mxu0 %v775_v0  ;;  %v255_v4 = vld [vmem:[%s215_s11] sm:$0xff]  ;;  %v569_v5 = vpack.c.bf16 %v261_v3, %v260_v2  ;;  %v256_v6 = vld [vmem:[%s215_s11 + $0x8] sm:$0xff]  ;;  %v262_v7 = vld [vmem:[%s224_s20 + $0x10] sm:$0xff]  ;;  %vm264_vm1 = vcmask 261120   ;;  %s529_s14 = sshll.u32 %s965_s12, 3  ;;  %s533_s8 = sshll.u32 %s825_s19, 7 }
  0x54   : > { %554 = vmatprep.mubr.msk.f32.mxu1 %vm776_vm0, %v777_v1  ;;  %565 = vmatprep.mubr.msk.f32.mxu0 %vm776_vm0, %v777_v1  ;;  %v263_v8 = vld [vmem:[%s224_s20 + $0x18] sm:$0xff]  ;;  %v575_v9 = vpack.c.bf16 %v256_v6, %v255_v4  ;;  %v257_v10 = vld [vmem:[%s215_s11 + $0x10] sm:$0xff]  ;;  %v259_v14 = vld [vmem:[%s1033_s1] sm:$0xff]  ;;  %s253_s5 = scalar_lea.vmem [#allocation7], %s529_s14  ;;  %s989_s10 = scalar_lea.hbm %s1036_s4, %s533_s8 }
  0x55   : > { %v258_v11 = vld [vmem:[%s215_s11 + $0x18] sm:$0xff]  ;;  %570 = vmatpush3.bf16.msra.mxu1 %v569_v5  ;;  %v572_v12 = vpack.c.bf16 %v263_v8, %v262_v7  ;;  %v254_v15 = vld [vmem:[%s1032_s0] sm:$0xff]  ;;  %s426_s9 = sshll.u32 %s253_s5, 4  ;;  %s413_s23 = scalar_lea.sflag [#allocation4], %s965_s12  ;;  %s991_s9 = int_to_ptr.vmem [resolvable:$true] %s426_s9 }
  0x56   : > { %576 = vmatpush3.bf16.msra.mxu0 %v575_v9  ;;  %571 = vmatprep.subr.bf16.mxu1 %v775_v0  ;;  %v578_v13 = vpack.c.bf16 %v258_v11, %v257_v10  ;;  %s698_s19 = scalar_lea.vmem %s991_s9, 128  ;;  %p1049_p1 = scmp.ne.s32.totalorder %s1042_s27, 0 }
  0x57   : > { %577 = vmatprep.subr.bf16.mxu0 %v775_v0  ;;  %p699_p12 = scmp.ne.s32.totalorder %s991_s9, %s698_s19  ;;  %s778_s25 = smov [#allocation7]  }
  0x58   : > { %s702_s11 = sshll.u32 %s778_s25, 4  ;;  %s703_s11 = int_to_ptr.vmem [resolvable:$false] %s702_s11 }
  0x59   : > { %573 = vmatpush3.bf16.msra.mxu1 %v572_v12  ;;  %p700_p13 = pnand %p699_p12, %p1049_p1  ;;  %s704_s29 = scalar_lea.vmem %s703_s11, 256 }
  0x5a   : > { %579 = vmatpush3.bf16.msra.mxu0 %v578_v13  ;;  %p705_p5 = scmp.lt.s32.totalorder %s991_s9, %s703_s11  ;;  %p706_p7 = scmp.lt.s32.totalorder %s704_s29, %s698_s19 }
  0x5b   : > { %p701_p9 = pneg %p700_p13 }
  0x5c   : > { %555 = vmatmul.mubr.msk.f32.vlgmr.msra.gmra.mrb[0].mxu1 %vm264_vm1, %v259_v14  ;;  %p707_p10 = por %p706_p7, %p705_p5 }
  0x5d   : > { %566 = vmatmul.mubr.msk.f32.vlgmr.msra.gmra.mrb[0].mxu0 %vm264_vm1, %v254_v15 }
  0x5e   : > { %p708_p11 = pnand %p707_p10, %p701_p9 }
 0x12f   : > { %v334_v16 = vpop.f32.mrb[0].mxu1 }
 0x130   : > { %v407_v17 = vpop.f32.mrb[0].mxu0  ;;  %v556_v18 = vpop.f32.mrb[1].mxu1 }
 0x131   : > { %v408_v19 = vadd.f32 %v407_v17, %v334_v16  ;;  %v567_v20 = vpop.f32.mrb[1].mxu0 }
 0x133   : > { %411 = vst [vmem:[%s253_s5] sm:$0xff] %v408_v19 }
 0x134   : > { %711 = shalt.err (!%p708_p11)
}
 0x135   : > { %s712_s12 = scalar_lea.hbm %s989_s10, 128  ;;  %s716_s22 = scalar_lea.hbm %s1036_s4, 384 }
 0x136   : > { %p713_p3 = scmp.ne.s32.totalorder %s989_s10, %s712_s12  ;;  %p717_p2 = scmp.lt.u32.totalorder %s989_s10, %s1036_s4 }
 0x137   : > { %p718_p4 = scmp.lt.u32.totalorder %s716_s22, %s712_s12  ;;  %p720_p12 = scmp.lt.u32.totalorder %s712_s12, %s989_s10 }
 0x138   : > { %p714_p8 = pnand %p713_p3, %p1049_p1 }
 0x139   : > { %p719_p6 = por %p718_p4, %p717_p2 }
 0x13a   : > { %p715_p0 = pneg %p714_p8 }
 0x13b   : > { %p721_p13 = por %p720_p12, %p719_p6 }
 0x13d   : > { %p722_p9 = pnand %p721_p13, %p715_p0 }
 0x13f   : > { %725 = shalt.err (!%p722_p9)
}
 0x140   : > { %585 = dma.vmem_to_hbm [thread:$0]  (%p1049_p1), %s991_s9, 128, %s989_s10, %s413_s23  }
 0x141 PF: > { %p599_p5 = scmp.ge.s32.totalorder %s768_s18, 2  ;;  %s438_s14 = sand.u32 1, %s756_s15  }
 0x142   : > { %p1050_p7 = scmp.ne.s32.totalorder %s1043_s28, 0  ;;  %s439_s8 = scalar_lea.sflag [#allocation4], %s438_s14 }
 0x144   : > { %p595_p10 = pnand %p599_p5, %p1050_p7 }
 0x146   : > { %751 = dma.done.wait (!%p595_p10), %s439_s8, 128  }
 0x147   : > { %753 = vsyncadd (!%p595_p10), %s439_s8, 4294967168  ;;  %p20_p11 = scmp.ge.s32.totalorder %s829_s21, 5   ;;  %s1051_s15 = smov %s760_s16 }
 0x148   : > { %s1052_s16 = smov %s764_s17  ;;  %s1053_s17 = smov %s841_s24 }
 0x149   : > { %s1054_s18 = smov %s829_s21  ;;  %22 = sbr.rel (!%p20_p11) target bundleno = 7 (0x7), region = 94 }
 0x150   :  { %444 = vsyncpa [#allocation3], 1 }
 0x151   :  { %446 = vsyncpa [#allocation3 + $0x1], 1 }
 0x152   :  { %447 = vsyncpa [#allocation6], 1 }
 0x153   :  { %449 = vsyncpa [#allocation6 + $0x1], 1 }
 0x154   :  { %450 = vsyncpa [#allocation4], 1 }
 0x155   :  { %452 = vsyncpa [#allocation4 + $0x1], 1 }

</bundles_post_ra>
